<compile_context>
chip_gen: v7x
topology: tpu7x:2x2x1
jax: 0.10.0
libtpu: 0.0.40
codegen_flags: <defaults>
</compile_context>

<pallas_src>
import jax
import jax.numpy as jnp
from jax.experimental import pallas as pl
from jax.experimental.pallas import tpu as pltpu


def _mlp_kernel(x_ref, w0_ref, b0_ref, w1_ref, b1_ref, w2_ref, b2_ref, o_ref):
    # x_ref: [8, TN]  (features on sublanes, batch on lanes)
    x = x_ref[...].astype(jnp.float32)

    # layer 0: Linear(8 -> 6) + sigmoid        W0 [6, 8] @ X [8, TN] -> [6, TN]
    h0 = jnp.dot(w0_ref[...], x, preferred_element_type=jnp.float32) + b0_ref[...]
    h0 = jax.nn.sigmoid(h0)

    # layer 1: Linear(6 -> 4) + sigmoid        W1 [4, 6] @ H0 [6, TN] -> [4, TN]
    h1 = jnp.dot(w1_ref[...], h0, preferred_element_type=jnp.float32) + b1_ref[...]
    h1 = jax.nn.sigmoid(h1)

    # layer 2: Linear(4 -> 1) + sigmoid        W2 [1, 4] @ H1 [4, TN] -> [1, TN]
    h2 = jnp.dot(w2_ref[...], h1, preferred_element_type=jnp.float32) + b2_ref[...]
    y = jax.nn.sigmoid(h2)

    o_ref[...] = y.astype(o_ref.dtype)


def _round_up(n, m):
    return ((n + m - 1) // m) * m


def logistic_regression_model(x, w0, b0, w1, b1, w2, b2, *, block_n=512):
    """Forward pass of LogisiticRegressionModel via a single gridded Pallas kernel.

    x:  [N, 8] float32
    w0: [6, 8], b0: [6]
    w1: [4, 6], b1: [4]
    w2: [1, 4], b2: [1]
    returns y_pred: [N, 1] float32
    """
    n, d = x.shape
    assert d == 8, "model expects 8 input features"

    # Batch tile on the lane axis: multiple of 128, capped at block_n.
    tn = min(block_n, _round_up(max(n, 1), 128))
    n_pad = _round_up(n, tn)

    # Batch-on-lanes layout: [8, N_pad], zero-padded tail (sliced off below).
    x_t = jnp.pad(x.astype(jnp.float32).T, ((0, 0), (0, n_pad - n)))

    # Biases as column vectors so they broadcast over the lane (batch) axis.
    b0c = b0.reshape(-1, 1).astype(jnp.float32)  # [6, 1]
    b1c = b1.reshape(-1, 1).astype(jnp.float32)  # [4, 1]
    b2c = b2.reshape(-1, 1).astype(jnp.float32)  # [1, 1]

    grid = (n_pad // tn,)

    def resident(shape):
        # Full-array block, constant index -> fetched once, stays in VMEM.
        return pl.BlockSpec(shape, lambda i: (0, 0))

    out = pl.pallas_call(
        _mlp_kernel,
        out_shape=jax.ShapeDtypeStruct((1, n_pad), jnp.float32),
        grid=grid,
        in_specs=[
            pl.BlockSpec((8, tn), lambda i: (0, i)),   # x tile: lane-dense batch
            resident(w0.shape), resident(b0c.shape),
            resident(w1.shape), resident(b1c.shape),
            resident(w2.shape), resident(b2c.shape),
        ],
        out_specs=pl.BlockSpec((1, tn), lambda i: (0, i)),  # lane-dense output slab
        compiler_params=pltpu.CompilerParams(
            dimension_semantics=("parallel",)),
    )(x_t, w0.astype(jnp.float32), b0c,
      w1.astype(jnp.float32), b1c,
      w2.astype(jnp.float32), b2c)

    # [1, N_pad] -> [N, 1]
    return out[:, :n].T


def _init_linear(key, out_features, in_features):
    # Deterministic init mimicking torch.nn.Linear's U(-1/sqrt(in), 1/sqrt(in)).
    kw, kb = jax.random.split(key)
    bound = 1.0 / jnp.sqrt(jnp.float32(in_features))
    w = jax.random.uniform(kw, (out_features, in_features), jnp.float32,
                           minval=-bound, maxval=bound)
    b = jax.random.uniform(kb, (out_features,), jnp.float32,
                           minval=-bound, maxval=bound)
    return w, b


if __name__ == "__main__":
    key = jax.random.PRNGKey(0)
    kx, k0, k1, k2 = jax.random.split(key, 4)

    # Small batch of 8 samples with 8 features each (Linear(8, 6) input).
    x = jax.random.normal(kx, (8, 8), jnp.float32)

    w0, b0 = _init_linear(k0, 6, 8)
    w1, b1 = _init_linear(k1, 4, 6)
    w2, b2 = _init_linear(k2, 1, 4)

    def ref_forward(xv):
        h = jax.nn.sigmoid(xv @ w0.T + b0)
        h = jax.nn.sigmoid(h @ w1.T + b1)
        return jax.nn.sigmoid(h @ w2.T + b2)

    # Main (small) case.
    y_pred = logistic_regression_model(x, w0, b0, w1, b1, w2, b2)
    y_pred = jax.block_until_ready(y_pred)
    assert y_pred.shape == (8, 1)
    assert jnp.allclose(y_pred, ref_forward(x), atol=1e-5, rtol=1e-5)

    # Larger, non-tile-multiple batch: exercises multi-step grid + tail padding.
    x2 = jax.random.normal(jax.random.PRNGKey(1), (1000, 8), jnp.float32)
    y2 = jax.block_until_ready(
        logistic_regression_model(x2, w0, b0, w1, b1, w2, b2))
    assert y2.shape == (1000, 1)
    assert jnp.allclose(y2, ref_forward(x2), atol=1e-5, rtol=1e-5)

    print("KERNEL_OK")
</pallas_src>

<mosaic_0001>
module attributes {stable_mosaic.version = 11 : i64} {
  func.func @_mlp_kernel(%arg0: i32, %arg1: memref<8x128xf32, #tpu.memory_space<vmem>>, %arg2: memref<6x8xf32, #tpu.memory_space<vmem>>, %arg3: memref<6x1xf32, #tpu.memory_space<vmem>>, %arg4: memref<4x6xf32, #tpu.memory_space<vmem>>, %arg5: memref<4x1xf32, #tpu.memory_space<vmem>>, %arg6: memref<1x4xf32, #tpu.memory_space<vmem>>, %arg7: memref<1x1xf32, #tpu.memory_space<vmem>>, %arg8: memref<1x128xf32, #tpu.memory_space<vmem>>) attributes {dimension_semantics = [#tpu.dimension_semantics<parallel>], iteration_bounds = array<i64: 1>, scalar_prefetch = 0 : i64, scratch_operands = 0 : i64, tpu.core_type = #tpu.core_type<tc>, window_params = [{transform_indices = @transform_0, window_bounds = array<i64: 8, 128>}, {pipeline_mode = #tpu.pipeline_mode<synchronous>, transform_indices = @transform_1, window_bounds = array<i64: 6, 8>}, {pipeline_mode = #tpu.pipeline_mode<synchronous>, transform_indices = @transform_2, window_bounds = array<i64: 6, 1>}, {pipeline_mode = #tpu.pipeline_mode<synchronous>, transform_indices = @transform_3, window_bounds = array<i64: 4, 6>}, {pipeline_mode = #tpu.pipeline_mode<synchronous>, transform_indices = @transform_4, window_bounds = array<i64: 4, 1>}, {pipeline_mode = #tpu.pipeline_mode<synchronous>, transform_indices = @transform_5, window_bounds = array<i64: 1, 4>}, {pipeline_mode = #tpu.pipeline_mode<synchronous>, transform_indices = @transform_6, window_bounds = array<i64: 1, 1>}, {transform_indices = @transform_7, window_bounds = array<i64: 1, 128>}]} {
    %c0 = arith.constant 0 : index
    %c0_0 = arith.constant 0 : index
    %0 = vector.load %arg1[%c0, %c0_0] : memref<8x128xf32, #tpu.memory_space<vmem>>, vector<8x128xf32>
    %c0_1 = arith.constant 0 : index
    %c0_2 = arith.constant 0 : index
    %1 = vector.load %arg2[%c0_1, %c0_2] : memref<6x8xf32, #tpu.memory_space<vmem>>, vector<6x8xf32>
    %cst = arith.constant dense<0.000000e+00> : vector<6x128xf32>
    %2 = tpu.matmul %1, %0, %cst {dimension_numbers = #tpu.dot_dimension_numbers<[1], [0], [0], [1], [0, 0, 1, 1], [], []>} : vector<6x8xf32>, vector<8x128xf32>, vector<6x128xf32> -> vector<6x128xf32>
    %c0_3 = arith.constant 0 : index
    %c0_4 = arith.constant 0 : index
    %3 = vector.load %arg3[%c0_3, %c0_4] : memref<6x1xf32, #tpu.memory_space<vmem>>, vector<6x1xf32>
    %4 = vector.broadcast %3 : vector<6x1xf32> to vector<6x128xf32>
    %5 = arith.addf %2, %4 : vector<6x128xf32>
    %6 = arith.negf %5 : vector<6x128xf32>
    %7 = math.exp %6 : vector<6x128xf32>
    %cst_5 = arith.constant 1.000000e+00 : f32
    %8 = vector.broadcast %cst_5 : f32 to vector<6x128xf32>
    %9 = arith.addf %8, %7 : vector<6x128xf32>
    %10 = arith.divf %8, %9 : vector<6x128xf32>
    %c0_6 = arith.constant 0 : index
    %c0_7 = arith.constant 0 : index
    %11 = vector.load %arg4[%c0_6, %c0_7] : memref<4x6xf32, #tpu.memory_space<vmem>>, vector<4x6xf32>
    %cst_8 = arith.constant dense<0.000000e+00> : vector<4x128xf32>
    %12 = tpu.matmul %11, %10, %cst_8 {dimension_numbers = #tpu.dot_dimension_numbers<[1], [0], [0], [1], [0, 0, 1, 1], [], []>} : vector<4x6xf32>, vector<6x128xf32>, vector<4x128xf32> -> vector<4x128xf32>
    %c0_9 = arith.constant 0 : index
    %c0_10 = arith.constant 0 : index
    %13 = vector.load %arg5[%c0_9, %c0_10] : memref<4x1xf32, #tpu.memory_space<vmem>>, vector<4x1xf32>
    %14 = vector.broadcast %13 : vector<4x1xf32> to vector<4x128xf32>
    %15 = arith.addf %12, %14 : vector<4x128xf32>
    %16 = arith.negf %15 : vector<4x128xf32>
    %17 = math.exp %16 : vector<4x128xf32>
    %cst_11 = arith.constant 1.000000e+00 : f32
    %18 = vector.broadcast %cst_11 : f32 to vector<4x128xf32>
    %19 = arith.addf %18, %17 : vector<4x128xf32>
    %20 = arith.divf %18, %19 : vector<4x128xf32>
    %c0_12 = arith.constant 0 : index
    %c0_13 = arith.constant 0 : index
    %21 = vector.load %arg6[%c0_12, %c0_13] : memref<1x4xf32, #tpu.memory_space<vmem>>, vector<1x4xf32>
    %cst_14 = arith.constant dense<0.000000e+00> : vector<1x128xf32>
    %22 = tpu.matmul %21, %20, %cst_14 {dimension_numbers = #tpu.dot_dimension_numbers<[1], [0], [0], [1], [0, 0, 1, 1], [], []>} : vector<1x4xf32>, vector<4x128xf32>, vector<1x128xf32> -> vector<1x128xf32>
    %c0_15 = arith.constant 0 : index
    %c0_16 = arith.constant 0 : index
    %23 = vector.load %arg7[%c0_15, %c0_16] : memref<1x1xf32, #tpu.memory_space<vmem>>, vector<1x1xf32>
    %24 = vector.broadcast %23 : vector<1x1xf32> to vector<1x128xf32>
    %25 = arith.addf %22, %24 : vector<1x128xf32>
    %26 = arith.negf %25 : vector<1x128xf32>
    %27 = math.exp %26 : vector<1x128xf32>
    %cst_17 = arith.constant 1.000000e+00 : f32
    %28 = vector.broadcast %cst_17 : f32 to vector<1x128xf32>
    %29 = arith.addf %28, %27 : vector<1x128xf32>
    %30 = arith.divf %28, %29 : vector<1x128xf32>
    %c0_18 = arith.constant 0 : index
    %c0_19 = arith.constant 0 : index
    %31 = vector.load %arg8[%c0_18, %c0_19] : memref<1x128xf32, #tpu.memory_space<vmem>>, vector<1x128xf32>
    tpu.vector_store %arg8[%c0_18, %c0_19], %30 {strides = array<i32>} : memref<1x128xf32, #tpu.memory_space<vmem>>, vector<1x128xf32>,
    return
  }
  func.func @transform_0(%arg0: i32) -> (i32, i32) {
    %c0_i32 = arith.constant 0 : i32
    %c0_i32_0 = arith.constant 0 : i32
    return %c0_i32, %arg0 : i32, i32
  }
  func.func @transform_1(%arg0: i32) -> (i32, i32) {
    %c0_i32 = arith.constant 0 : i32
    %c0_i32_0 = arith.constant 0 : i32
    %c0_i32_1 = arith.constant 0 : i32
    return %c0_i32, %c0_i32_0 : i32, i32
  }
  func.func @transform_2(%arg0: i32) -> (i32, i32) {
    %c0_i32 = arith.constant 0 : i32
    %c0_i32_0 = arith.constant 0 : i32
    %c0_i32_1 = arith.constant 0 : i32
    return %c0_i32, %c0_i32_0 : i32, i32
  }
  func.func @transform_3(%arg0: i32) -> (i32, i32) {
    %c0_i32 = arith.constant 0 : i32
    %c0_i32_0 = arith.constant 0 : i32
    %c0_i32_1 = arith.constant 0 : i32
    return %c0_i32, %c0_i32_0 : i32, i32
  }
  func.func @transform_4(%arg0: i32) -> (i32, i32) {
    %c0_i32 = arith.constant 0 : i32
    %c0_i32_0 = arith.constant 0 : i32
    %c0_i32_1 = arith.constant 0 : i32
    return %c0_i32, %c0_i32_0 : i32, i32
  }
  func.func @transform_5(%arg0: i32) -> (i32, i32) {
    %c0_i32 = arith.constant 0 : i32
    %c0_i32_0 = arith.constant 0 : i32
    %c0_i32_1 = arith.constant 0 : i32
    return %c0_i32, %c0_i32_0 : i32, i32
  }
  func.func @transform_6(%arg0: i32) -> (i32, i32) {
    %c0_i32 = arith.constant 0 : i32
    %c0_i32_0 = arith.constant 0 : i32
    %c0_i32_1 = arith.constant 0 : i32
    return %c0_i32, %c0_i32_0 : i32, i32
  }
  func.func @transform_7(%arg0: i32) -> (i32, i32) {
    %c0_i32 = arith.constant 0 : i32
    %c0_i32_0 = arith.constant 0 : i32
    return %c0_i32, %arg0 : i32, i32
  }
}

</mosaic_0001>

<bundles_post_ra>
// kernel: tpu_custom_call.1
= control target key start
LH: loop header
LB: loop body
LE: loop exit
PB: predicated region body
PF: predicated region fallthrough
CT: control target
= control target key end

     0   :  { %s466_s0 = inlined_call_operand.vmem [shape: f32[8,128], index: 0, kind: input, shape index: {}]   ;;  %s467_s1 = inlined_call_operand.vmem [shape: f32[6,8], index: 1, kind: input, shape index: {}]   ;;  %s468_s2 = inlined_call_operand.vmem [shape: f32[6,1], index: 2, kind: input, shape index: {}]   ;;  %s469_s3 = inlined_call_operand.vmem [shape: f32[4,6], index: 3, kind: input, shape index: {}]   ;;  %s470_s4 = inlined_call_operand.vmem [shape: f32[4,1], index: 4, kind: input, shape index: {}]   ;;  %s471_s5 = inlined_call_operand.vmem [shape: f32[1,4], index: 5, kind: input, shape index: {}]   ;;  %s472_s6 = inlined_call_operand.<no memory space> [shape: f32[1,1], index: 6, kind: input, shape index: {}]   ;;  %s473_s7 = inlined_call_operand.hbm [shape: f32[1,128], index: 7, kind: output, shape index: {}]  }
   0x1   :  { %v12_v0 = vstv %s472_s6 }
   0x2   :  { %13 = vst [vmem:[#allocation2] sm:$0x1] %v12_v0 }
   0x3   :  { %v29_v1 = vld [vmem:[%s466_s0] sm:$0xff]  ;;  %vm37_vm0 = vcmask 64512   ;;  %v389_v3 = vmov 0.0   ;;  %vm390_vm1 = vmmov 0   ;;  %v391_v5 = vmov 0  }
   0x4   :  { %v30_v2 = vld [vmem:[%s467_s1] sm:$0x3f]  ;;  %332 = vmatprep.subr.mxu0 %v389_v3  ;;  %334 = vmatprep.mubr.msk.f32.mxu0 %vm390_vm1, %v389_v3 }
   0x5   :  { %v31_v4 = vld [vmem:[%s468_s2] sm:$0x3f]  ;;  %333 = vmatpush3.msra.mxu0 %v29_v1  ;;  %351 = vset.pattern.permute.xlu0 %v391_v5 }
   0x6   :  { %14 = vsyncpa [#allocation4], 0  ;;  %335 = vmatmul.mubr.msk.f32.vlgmr.msra.gmra.mrb[0].mxu0 %vm37_vm0, %v30_v2  ;;  %34 = vperm.xlu0 %351, %v31_v4   ;;  %v118_v6 = vld [vmem:[%s470_s4] sm:$0xf]  ;;  %vm128_vm2 = vcmask 1045504   ;;  %vm124_vm3 = vcmask 48128   ;;  %v215_v26 = vlaneseq }
   0x7   :  { %337 = vmatprep.subr.mxu1 %v389_v3  ;;  %339 = vmatprep.mubr.msk.f32.mxu1 %vm390_vm1, %v389_v3  ;;  %v117_v14 = vld [vmem:[%s469_s3] sm:$0xf]  ;;  %vm223_vm4 = vcmask 1043456   ;;  %vm219_vm5 = vcmask 31744   ;;  %s392_s3 = smov [#allocation3]  }
   0x8   :  { %342 = vmatprep.subr.mxu0 %v389_v3  ;;  %344 = vmatprep.mubr.msk.f32.mxu0 %vm390_vm1, %v389_v3  ;;  %v208_v24 = vld [vmem:[%s471_s5] sm:$0x1]  ;;  %v216_v27 = vshrl.u32 %v215_v26, 7  ;;  %s310_s10 = sshll.u32 %s392_s3, 4  ;;  %s311_s10 = int_to_ptr.vmem [resolvable:$true] %s310_s10 }
   0x9   :  { %352 = vset.pattern.permute.xlu1 %v391_v5  ;;  %v209_v16 = vld [vmem:[#allocation2] sm:$0x1]  ;;  %s365_s5 = scalar_lea.vmem %s311_s10, 16  ;;  %s369_s11 = scalar_lea.vmem %s311_s10, 32 }
   0xa   :  { %121 = vperm.xlu0 %351, %v118_v6   ;;  %212 = vperm.xlu1 %352, %v209_v16   ;;  %v217_v28 = vsub.s32 0, %v216_v27  ;;  %p366_p0 = scmp.ne.s32.totalorder %s311_s10, %s365_s5  ;;  %p370_p1 = scmp.lt.s32.totalorder %s311_s10, %s311_s10 }
   0xb   :  { %p371_p2 = scmp.lt.s32.totalorder %s369_s11, %s365_s5 }
   0xd   :  { %p372_p3 = por %p371_p2, %p370_p1 }
   0xf   :  { %p373_p4 = pnand %p372_p3, %p366_p0 }
  0x85   :  { %v35_v7 = vpop.permute.xlu0 %34 }
  0x89   :  { %v122_v17 = vpop.permute.xlu0 %121  ;;  %v213_v29 = vpop.permute.xlu1 %212 }
  0x8a   :  { %v218_v30 = vrot.slane %v213_v29, %v217_v28 }
  0xd9   :  { %v107_v8 = vpop.f32.mrb[0].mxu0 }
  0xda   :  { %v108_v9 = vadd.f32 %v107_v8, %v35_v7  ;;  %v336_v10 = vpop.f32.mrb[1].mxu0 }
  0xdc   :  { %v319_v11 = vmul.f32 -1.442695, %v108_v9 }
  0xde   :  { %353 = vpow2.f32 %v319_v11 }
  0xe8   :  { %v354_v12 = vpop.eup %353 }
  0xe9   :  { %v114_v13 = vadd.f32 1.0, %v354_v12 }
  0xeb   :  { %355 = vrcp.f32 %v114_v13 }
  0xf5   :  { %v356_v15 = vpop.eup %355 }
  0xf6   :  { %338 = vmatpush3.msk.msra.mxu1 %vm128_vm2, %v356_v15 }
  0xf7   :  { %340 = vmatmul.mubr.msk.f32.vlgmr.msra.gmra.mrb[0].mxu1 %vm124_vm3, %v117_v14 }
 0x1ca   :  { %v198_v18 = vpop.f32.mrb[0].mxu1 }
 0x1cb   :  { %v199_v19 = vadd.f32 %v198_v18, %v122_v17  ;;  %v341_v20 = vpop.f32.mrb[1].mxu1 }
 0x1cd   :  { %v322_v21 = vmul.f32 -1.442695, %v199_v19 }
 0x1cf   :  { %357 = vpow2.f32 %v322_v21 }
 0x1d9   :  { %v358_v22 = vpop.eup %357 }
 0x1da   :  { %v205_v23 = vadd.f32 1.0, %v358_v22 }
 0x1dc   :  { %359 = vrcp.f32 %v205_v23 }
 0x1e6   :  { %v360_v25 = vpop.eup %359 }
 0x1e7   :  { %343 = vmatpush3.msk.msra.mxu0 %vm223_vm4, %v360_v25 }
 0x1e8   :  { %345 = vmatmul.mubr.msk.f32.vlgmr.msra.gmra.mrb[2].mxu0 %vm219_vm5, %v208_v24 }
 0x2bb   :  { %v293_v31 = vpop.f32.mrb[2].mxu0 }
 0x2bc   :  { %v294_v32 = vadd.f32 %v293_v31, %v218_v30  ;;  %v346_v33 = vpop.f32.mrb[3].mxu0 }
 0x2be   :  { %v325_v34 = vmul.f32 -1.442695, %v294_v32 }
 0x2c0   :  { %361 = vpow2.f32 %v325_v34 }
 0x2ca   :  { %v362_v35 = vpop.eup %361 }
 0x2cb   :  { %v300_v36 = vadd.f32 1.0, %v362_v35 }
 0x2cd   :  { %363 = vrcp.f32 %v300_v36 }
 0x2d7   :  { %v364_v37 = vpop.eup %363 }
 0x2d8   :  { %303 = vst [vmem:[#allocation3] sm:$0x1] %v364_v37 }
 0x2d9   :  { %376 = shalt.err (!%p373_p4)
}
 0x2da   :  { %s377_s14 = scalar_lea.hbm %s473_s7, 16 }
 0x2db   :  { %p378_p5 = scmp.ne.s32.totalorder %s473_s7, %s377_s14  ;;  %p381_p6 = scmp.lt.u32.totalorder %s377_s14, %s473_s7 }
 0x2dd   :  { %p383_p7 = pnand %p381_p6, %p378_p5 }
 0x2df   :  { %386 = shalt.err (!%p383_p7)
}
 0x2e0   :  { %313 = dma.vmem_to_hbm [thread:$0]  %s311_s10, 16, %s473_s7, [#allocation4]  }
 0x2e1   :  { %387 = dma.done.wait [#allocation4], 16  }
 0x2e2   :  { %388 = vsyncadd [#allocation4], 4294967280 }
 0x2e3   :  { %317 = vsyncpa [#allocation4], 1 }

</bundles_post_ra>
